<compile_context>
chip_gen: v7x
topology: tpu7x:2x2x1
jax: 0.10.0
libtpu: 0.0.40
codegen_flags: <defaults>
</compile_context>

<pallas_src>
import functools

import jax
import jax.numpy as jnp
from jax.experimental import pallas as pl
from jax.experimental.pallas import tpu as pltpu


def _act(x, act_type):
    if act_type == "ReLU":
        return jnp.maximum(x, 0.0)
    elif act_type == "GeLU":
        # Exact erf-based GELU to match torch.nn.GELU()'s default.
        # (approximate=True would route through the EUP and is cheaper on v6e,
        #  but deviates slightly from the PyTorch reference.)
        return jax.nn.gelu(x, approximate=False)
    raise ValueError(f"unsupported act_type {act_type}")


def _round_up(a, m):
    return (a + m - 1) // m * m


def mlp_kernel(x_ref, w_in_ref, w_hidden_ref, w_out_ref, o_ref, *,
               act_type, num_layers):
    """Fused MLP forward for one batch tile (all weights resident in VMEM).

    x_ref:        (tm, d_in_p)                bf16
    w_in_ref:     (d_in_p, d_model_p)         bf16   (already (K, N) layout)
    w_hidden_ref: (L, d_model_p, d_model_p)   bf16   (already (K, N) layout)
    w_out_ref:    (d_model_p, d_class_p)      bf16   (already (K, N) layout)
    o_ref:        (tm, d_class_p)             f32
    """
    h = jnp.dot(x_ref[...], w_in_ref[...], preferred_element_type=jnp.float32)
    h = _act(h, act_type)
    # num_layers is a trace-time constant -> static (unrolled) Python loop.
    for i in range(num_layers):
        h = jnp.dot(h.astype(jnp.bfloat16), w_hidden_ref[i],
                    preferred_element_type=jnp.float32)
        h = _act(h, act_type)
    o_ref[...] = jnp.dot(h.astype(jnp.bfloat16), w_out_ref[...],
                         preferred_element_type=jnp.float32
                         ).astype(o_ref.dtype)


def mnist_mlp_forward(x, w_in, w_hidden, w_out, *, act_type="ReLU", tm=None):
    """x: (M, d_input) f32; weights in PyTorch (d_out, d_in) layout."""
    M, d_input = x.shape
    d_model = w_in.shape[0]
    num_layers = w_hidden.shape[0]
    d_class = w_out.shape[0]
    assert w_in.shape == (d_model, d_input)
    assert w_hidden.shape == (num_layers, d_model, d_model)
    assert w_out.shape == (d_class, d_model)

    # --- pad feature dims to full 128-lane vregs --------------------------
    d_in_p = _round_up(d_input, 128)
    d_model_p = _round_up(d_model, 128)
    d_class_p = _round_up(d_class, 128)

    # --- batch tiling: tm a multiple of 16 (bf16 packing), tm | M_p --------
    if tm is None:
        tm = min(_round_up(M, 16), 512)
    tm = min(_round_up(tm, 16), _round_up(M, 16))
    M_p = _round_up(M, tm)
    grid = (pl.cdiv(M_p, tm),)

    # --- one-time host-side layout prep: (K, N) transpose, bf16 cast,
    #     zero-pad (act(0) == 0, so padding never leaks into real outputs) ---
    x_p = jnp.zeros((M_p, d_in_p), jnp.bfloat16).at[:M, :d_input].set(
        x.astype(jnp.bfloat16))
    w_in_t = jnp.zeros((d_in_p, d_model_p), jnp.bfloat16).at[
        :d_input, :d_model].set(w_in.T.astype(jnp.bfloat16))
    w_hid_t = jnp.zeros((num_layers, d_model_p, d_model_p), jnp.bfloat16).at[
        :, :d_model, :d_model].set(
        jnp.transpose(w_hidden, (0, 2, 1)).astype(jnp.bfloat16))
    w_out_t = jnp.zeros((d_model_p, d_class_p), jnp.bfloat16).at[
        :d_model, :d_class].set(w_out.T.astype(jnp.bfloat16))

    kernel = functools.partial(mlp_kernel, act_type=act_type,
                               num_layers=num_layers)

    flops = 2 * M_p * (d_in_p * d_model_p
                       + num_layers * d_model_p * d_model_p
                       + d_model_p * d_class_p)
    transcendentals = (M_p * d_model_p * (num_layers + 1)
                       if act_type == "GeLU" else 0)
    bytes_accessed = (x_p.size * 2 + w_in_t.size * 2 + w_hid_t.size * 2
                      + w_out_t.size * 2 + M_p * d_class_p * 4)

    out_p = pl.pallas_call(
        kernel,
        out_shape=jax.ShapeDtypeStruct((M_p, d_class_p), jnp.float32),
        grid=grid,
        in_specs=[
            # x: tiled over padded batch rows.
            pl.BlockSpec((tm, d_in_p), lambda i: (i, 0)),
            # Grid-invariant weights: constant index_map -> fetched once.
            pl.BlockSpec((d_in_p, d_model_p), lambda i: (0, 0)),
            pl.BlockSpec((num_layers, d_model_p, d_model_p),
                         lambda i: (0, 0, 0)),
            pl.BlockSpec((d_model_p, d_class_p), lambda i: (0, 0)),
        ],
        out_specs=pl.BlockSpec((tm, d_class_p), lambda i: (i, 0)),
        compiler_params=pltpu.CompilerParams(
            dimension_semantics=("parallel",),
            vmem_limit_bytes=32 * 1024 * 1024,
        ),
        cost_estimate=pl.CostEstimate(
            flops=flops,
            transcendentals=transcendentals,
            bytes_accessed=bytes_accessed),
    )(x_p, w_in_t, w_hid_t, w_out_t)

    # Slice away batch / class padding.
    return out_p[:M, :d_class]


def mlp_reference(x, w_in, w_hidden, w_out, act_type="ReLU"):
    h = _act(x @ w_in.T, act_type)
    for i in range(w_hidden.shape[0]):
        h = _act(h @ w_hidden[i].T, act_type)
    return h @ w_out.T


def init_params(key, num_layers, d_input, d_model, d_class, weight_scale=1.0):
    """Matches Dense.__init__: W ~ N(0, weight_scale/sqrt(d_in)), shape (d_out, d_in)."""
    k_in, k_hid, k_out = jax.random.split(key, 3)
    w_in = jax.random.normal(k_in, (d_model, d_input), jnp.float32) \
        * (weight_scale / jnp.sqrt(d_input))
    w_hidden = jax.random.normal(k_hid, (num_layers, d_model, d_model),
                                 jnp.float32) * (weight_scale / jnp.sqrt(d_model))
    w_out = jax.random.normal(k_out, (d_class, d_model), jnp.float32) \
        * (weight_scale / jnp.sqrt(d_model))
    return w_in, w_hidden, w_out


if __name__ == "__main__":
    # Small shapes consistent with the module's forward:
    #   x: (batch, d_input), MLP widths d_model, output d_class.
    batch, num_layers, d_input, d_model, d_class = 32, 2, 32, 32, 10
    act_type = "ReLU"

    key = jax.random.PRNGKey(0)
    kx, kp = jax.random.split(key)
    x = jax.random.normal(kx, (batch, d_input), jnp.float32)
    w_in, w_hidden, w_out = init_params(kp, num_layers, d_input, d_model,
                                        d_class, weight_scale=1.0)

    # tm=16 -> 2 grid steps: exercises the batch tiling / megacore path.
    out = mnist_mlp_forward(x, w_in, w_hidden, w_out, act_type=act_type, tm=16)
    out = jax.block_until_ready(out)

    ref = mlp_reference(x, w_in, w_hidden, w_out, act_type=act_type)
    assert out.shape == (batch, d_class)
    # bf16 matmuls (f32 accumulate) deviate slightly from the pure-f32 reference.
    assert jnp.allclose(out, ref, atol=5e-2, rtol=5e-2), "mismatch vs reference"

    print("KERNEL_OK")
</pallas_src>

<mosaic_0001>
module attributes {stable_mosaic.version = 11 : i64} {
  func.func @mlp_kernel(%arg0: i32, %arg1: memref<16x128xbf16, #tpu.memory_space<vmem>>, %arg2: memref<128x128xbf16, #tpu.memory_space<vmem>>, %arg3: memref<2x128x128xbf16, #tpu.memory_space<vmem>>, %arg4: memref<128x128xbf16, #tpu.memory_space<vmem>>, %arg5: memref<16x128xf32, #tpu.memory_space<vmem>>) attributes {dimension_semantics = [#tpu.dimension_semantics<parallel>], iteration_bounds = array<i64: 2>, scalar_prefetch = 0 : i64, scratch_operands = 0 : i64, tpu.core_type = #tpu.core_type<tc>, window_params = [{transform_indices = @transform_0, window_bounds = array<i64: 16, 128>}, {pipeline_mode = #tpu.pipeline_mode<synchronous>, transform_indices = @transform_1, window_bounds = array<i64: 128, 128>}, {pipeline_mode = #tpu.pipeline_mode<synchronous>, transform_indices = @transform_2, window_bounds = array<i64: 2, 128, 128>}, {pipeline_mode = #tpu.pipeline_mode<synchronous>, transform_indices = @transform_3, window_bounds = array<i64: 128, 128>}, {transform_indices = @transform_4, window_bounds = array<i64: 16, 128>}]} {
    %c0 = arith.constant 0 : index
    %c0_0 = arith.constant 0 : index
    %0 = vector.load %arg1[%c0, %c0_0] : memref<16x128xbf16, #tpu.memory_space<vmem>>, vector<16x128xbf16>
    %c0_1 = arith.constant 0 : index
    %c0_2 = arith.constant 0 : index
    %1 = vector.load %arg2[%c0_1, %c0_2] : memref<128x128xbf16, #tpu.memory_space<vmem>>, vector<128x128xbf16>
    %cst = arith.constant dense<0.000000e+00> : vector<16x128xf32>
    %2 = tpu.matmul %0, %1, %cst {dimension_numbers = #tpu.dot_dimension_numbers<[1], [0], [0], [1], [0, 0, 1, 1], [], []>} : vector<16x128xbf16>, vector<128x128xbf16>, vector<16x128xf32> -> vector<16x128xf32>
    %cst_3 = arith.constant 0.000000e+00 : f32
    %3 = vector.broadcast %cst_3 : f32 to vector<16x128xf32>
    %4 = arith.maximumf %2, %3 : vector<16x128xf32>
    %5 = arith.truncf %4 : vector<16x128xf32> to vector<16x128xbf16>
    %c0_4 = arith.constant 0 : index
    %c0_5 = arith.constant 0 : index
    %c0_6 = arith.constant 0 : index
    %6 = vector.load %arg3[%c0_4, %c0_5, %c0_6] : memref<2x128x128xbf16, #tpu.memory_space<vmem>>, vector<1x128x128xbf16>
    %7 = vector.shape_cast %6 : vector<1x128x128xbf16> to vector<128x128xbf16>
    %cst_7 = arith.constant dense<0.000000e+00> : vector<16x128xf32>
    %8 = tpu.matmul %5, %7, %cst_7 {dimension_numbers = #tpu.dot_dimension_numbers<[1], [0], [0], [1], [0, 0, 1, 1], [], []>} : vector<16x128xbf16>, vector<128x128xbf16>, vector<16x128xf32> -> vector<16x128xf32>
    %cst_8 = arith.constant 0.000000e+00 : f32
    %9 = vector.broadcast %cst_8 : f32 to vector<16x128xf32>
    %10 = arith.maximumf %8, %9 : vector<16x128xf32>
    %11 = arith.truncf %10 : vector<16x128xf32> to vector<16x128xbf16>
    %c1 = arith.constant 1 : index
    %c0_9 = arith.constant 0 : index
    %c0_10 = arith.constant 0 : index
    %12 = vector.load %arg3[%c1, %c0_9, %c0_10] : memref<2x128x128xbf16, #tpu.memory_space<vmem>>, vector<1x128x128xbf16>
    %13 = vector.shape_cast %12 : vector<1x128x128xbf16> to vector<128x128xbf16>
    %cst_11 = arith.constant dense<0.000000e+00> : vector<16x128xf32>
    %14 = tpu.matmul %11, %13, %cst_11 {dimension_numbers = #tpu.dot_dimension_numbers<[1], [0], [0], [1], [0, 0, 1, 1], [], []>} : vector<16x128xbf16>, vector<128x128xbf16>, vector<16x128xf32> -> vector<16x128xf32>
    %cst_12 = arith.constant 0.000000e+00 : f32
    %15 = vector.broadcast %cst_12 : f32 to vector<16x128xf32>
    %16 = arith.maximumf %14, %15 : vector<16x128xf32>
    %17 = arith.truncf %16 : vector<16x128xf32> to vector<16x128xbf16>
    %c0_13 = arith.constant 0 : index
    %c0_14 = arith.constant 0 : index
    %18 = vector.load %arg4[%c0_13, %c0_14] : memref<128x128xbf16, #tpu.memory_space<vmem>>, vector<128x128xbf16>
    %cst_15 = arith.constant dense<0.000000e+00> : vector<16x128xf32>
    %19 = tpu.matmul %17, %18, %cst_15 {dimension_numbers = #tpu.dot_dimension_numbers<[1], [0], [0], [1], [0, 0, 1, 1], [], []>} : vector<16x128xbf16>, vector<128x128xbf16>, vector<16x128xf32> -> vector<16x128xf32>
    %c0_16 = arith.constant 0 : index
    %c0_17 = arith.constant 0 : index
    %20 = vector.load %arg5[%c0_16, %c0_17] : memref<16x128xf32, #tpu.memory_space<vmem>>, vector<16x128xf32>
    tpu.vector_store %arg5[%c0_16, %c0_17], %19 {strides = array<i32>} : memref<16x128xf32, #tpu.memory_space<vmem>>, vector<16x128xf32>,
    return
  }
  func.func @transform_0(%arg0: i32) -> (i32, i32) {
    %c0_i32 = arith.constant 0 : i32
    %c0_i32_0 = arith.constant 0 : i32
    return %arg0, %c0_i32 : i32, i32
  }
  func.func @transform_1(%arg0: i32) -> (i32, i32) {
    %c0_i32 = arith.constant 0 : i32
    %c0_i32_0 = arith.constant 0 : i32
    %c0_i32_1 = arith.constant 0 : i32
    return %c0_i32, %c0_i32_0 : i32, i32
  }
  func.func @transform_2(%arg0: i32) -> (i32, i32, i32) {
    %c0_i32 = arith.constant 0 : i32
    %c0_i32_0 = arith.constant 0 : i32
    %c0_i32_1 = arith.constant 0 : i32
    %c0_i32_2 = arith.constant 0 : i32
    return %c0_i32, %c0_i32_0, %c0_i32_1 : i32, i32, i32
  }
  func.func @transform_3(%arg0: i32) -> (i32, i32) {
    %c0_i32 = arith.constant 0 : i32
    %c0_i32_0 = arith.constant 0 : i32
    %c0_i32_1 = arith.constant 0 : i32
    return %c0_i32, %c0_i32_0 : i32, i32
  }
  func.func @transform_4(%arg0: i32) -> (i32, i32) {
    %c0_i32 = arith.constant 0 : i32
    %c0_i32_0 = arith.constant 0 : i32
    return %arg0, %c0_i32 : i32, i32
  }
}

</mosaic_0001>

<bundles_post_ra>
// kernel: tpu_custom_call.1
= control target key start
LH: loop header
LB: loop body
LE: loop exit
PB: predicated region body
PF: predicated region fallthrough
CT: control target
= control target key end

     0   :  { %9 = vsyncpa [#allocation3], 0  ;;  %s1647_s0 = inlined_call_operand.hbm [shape: bf16[32,128], index: 0, kind: input, shape index: {}]   ;;  %s1648_s1 = inlined_call_operand.hbm [shape: bf16[128,128], index: 1, kind: input, shape index: {}]   ;;  %s1649_s2 = inlined_call_operand.hbm [shape: bf16[2,128,128], index: 2, kind: input, shape index: {}]   ;;  %s1650_s3 = inlined_call_operand.hbm [shape: bf16[128,128], index: 3, kind: input, shape index: {}]   ;;  %s1651_s4 = inlined_call_operand.hbm [shape: f32[32,128], index: 4, kind: output, shape index: {}]  }
   0x1   :  { %11 = vsyncpa [#allocation3 + $0x1], 0 }
   0x2   :  { %12 = vsyncpa [#allocation6], 0 }
   0x3   :  { %13 = vsyncpa [#allocation9], 0 }
   0x4   :  { %14 = vsyncpa [#allocation4], 0 }
   0x5   :  { %16 = vsyncpa [#allocation4 + $0x1], 0  ;;  %s1332_s15 = smov 0   ;;  %s1334_s16 = smov 0  }
   0x6   :  { %s1336_s17 = smov 0   ;;  %s1338_s18 = smov 0  }
   0x7 LB: > { %s1353_s19 = sadd.s32 4294967295, %s1294_s18   ;;  %s819_s20 = sadd.s32 4294967294, %s1294_s18   ;;  %s1294_s18 = sphi %s1338_s18, %s1674_s18   ;;  %s1290_s17 = sphi %s1336_s17, %s1673_s17   ;;  %s1286_s16 = sphi %s1334_s16, %s1672_s16   ;;  %s1282_s15 = sphi %s1332_s15, %s1671_s15  }
   0x8   : > { %p42_p0 = scmp.ne.s32.totalorder %s1286_s16, %s1282_s15  ;;  %p1652_p1 = scmp.eq.s32.totalorder %s1353_s19, 0 }
   0x9   : > { %p135_p3 = scmp.eq.s32.totalorder %s819_s20, 1  ;;  %p820_p5 = scmp.ge.s32.totalorder %s1294_s18, 1 }
   0xa   : > { %p1362_p4 = por %p1652_p1, %p42_p0  ;;  %p142_p7 = scmp.lt.s32.totalorder %s1294_s18, 3 }
   0xb   : > { %p1367_p6 = por %p135_p3, %p42_p0  ;;  %s1296_s24 = smov [#allocation5]  }
   0xc   : > { %s1655_s21 = scalar_select %p1362_p4, 1, 0 }
   0xd   : > { %s1656_s22 = scalar_select %p1367_p6, 1, 0 }
   0xe   : > { %p1372_p8 = pnand %p820_p5, %p142_p7  ;;  %s154_s25 = sshll.u32 %s1296_s24, 4  ;;  %s1376_s25 = int_to_ptr.vmem [resolvable:$true] %s154_s25 }
   0xf   : > { %s1297_s27 = smov [#allocation7]   ;;  %s1298_s29 = smov [#allocation8]  }
  0x10   : > { %s1657_s23 = scalar_select %p1372_p8, 1, 0 }
  0x11   : > { %p1006_p9 = pneg %p1372_p8  ;;  %s167_s28 = sshll.u32 %s1297_s27, 4  ;;  %s1387_s28 = int_to_ptr.vmem [resolvable:$true] %s167_s28 }
  0x12   : > { %s1389_s30 = sshll.u32 %s1298_s29, 4  ;;  %s1106_s7 = scalar_lea.hbm %s1648_s1, 1024  ;;  %s181_s30 = int_to_ptr.vmem [resolvable:$true] %s1389_s30 }
  0x13   : > { %p1383_p11 = pnand %p1006_p9, %p1652_p1  ;;  %p1107_p12 = scmp.ne.s32.totalorder %s1648_s1, %s1106_s7 }
  0x14   : > { %p1113_p5 = scmp.lt.u32.totalorder %s1106_s7, %s1648_s1 }
  0x15   : > { %p1399_p13 = pneg %p1383_p11 }
  0x17   : > { %p1109_p0 = pnand %p1399_p13, %p1107_p12 }
  0x19   : > { %p1110_p3 = pneg %p1109_p0 }
  0x1b   : > { %p1115_p7 = pnand %p1113_p5, %p1110_p3 }
  0x1d   : > { %1118 = shalt.err (!%p1115_p7)
}
  0x1e   : > { %s1119_s13 = scalar_lea.vmem %s1376_s25, 1024  ;;  %p1127_p2 = scmp.lt.s32.totalorder %s1376_s25, %s1376_s25 }
  0x1f   : > { %p1120_p9 = scmp.ne.s32.totalorder %s1376_s25, %s1119_s13  ;;  %p1128_p6 = scmp.lt.s32.totalorder %s1119_s13, %s1119_s13 }
  0x21   : > { %p1122_p10 = pnand %p1120_p9, %p1399_p13  ;;  %p1129_p12 = por %p1128_p6, %p1127_p2 }
  0x23   : > { %p1123_p1 = pneg %p1122_p10 }
  0x25   : > { %p1130_p0 = pnand %p1129_p12, %p1123_p1 }
  0x27   : > { %1133 = shalt.err (!%p1130_p0)
}
  0x28   : > { %s1299_s14 = smov 64   ;;  %s1300_s20 = smov 4  }
  0x29   : > { %1009 = dma.hbm_to_vmem [thread:$0]  (!%p1383_p11), %s1648_s1, 1024, %s1376_s25, [#allocation6], %s1299_s14, %s1299_s14, %s1300_s20  }
  0x2a   : > { %s1134_s6 = scalar_lea.hbm %s1649_s2, 2048 }
  0x2b   : > { %p1135_p1 = scmp.ne.s32.totalorder %s1649_s2, %s1134_s6  ;;  %p1141_p10 = scmp.lt.u32.totalorder %s1134_s6, %s1649_s2 }
  0x2d   : > { %p1137_p2 = pnand %p1135_p1, %p1399_p13 }
  0x2f   : > { %p1138_p6 = pneg %p1137_p2 }
  0x31   : > { %p1143_p3 = pnand %p1141_p10, %p1138_p6 }
  0x33   : > { %1146 = shalt.err (!%p1143_p3)
}
  0x34   : > { %s1147_s25 = scalar_lea.vmem %s1387_s28, 2048  ;;  %p1155_p12 = scmp.lt.s32.totalorder %s1387_s28, %s1387_s28 }
  0x35   : > { %p1148_p5 = scmp.ne.s32.totalorder %s1387_s28, %s1147_s25  ;;  %p1156_p0 = scmp.lt.s32.totalorder %s1147_s25, %s1147_s25 }
  0x37   : > { %p1150_p7 = pnand %p1148_p5, %p1399_p13  ;;  %p1157_p1 = por %p1156_p0, %p1155_p12 }
  0x39   : > { %p1151_p9 = pneg %p1150_p7 }
  0x3b   : > { %p1158_p2 = pnand %p1157_p1, %p1151_p9 }
  0x3d   : > { %1161 = shalt.err (!%p1158_p2)
}
  0x3e   : > { %1012 = dma.hbm_to_vmem [thread:$0]  (!%p1383_p11), %s1649_s2, 2048, %s1387_s28, [#allocation6], %s1299_s14, %s1299_s14, %s1300_s20  }
  0x3f   : > { %s1162_s29 = scalar_lea.hbm %s1650_s3, 1024 }
  0x40   : > { %p1163_p6 = scmp.ne.s32.totalorder %s1650_s3, %s1162_s29  ;;  %p1169_p5 = scmp.lt.u32.totalorder %s1162_s29, %s1650_s3 }
  0x42   : > { %p1165_p10 = pnand %p1163_p6, %p1399_p13 }
  0x44   : > { %p1166_p3 = pneg %p1165_p10 }
  0x46   : > { %p1171_p7 = pnand %p1169_p5, %p1166_p3 }
  0x48   : > { %1174 = shalt.err (!%p1171_p7)
}
  0x49   : > { %s1175_s9 = scalar_lea.vmem %s181_s30, 1024  ;;  %p1183_p1 = scmp.lt.s32.totalorder %s181_s30, %s181_s30 }
  0x4a   : > { %p1176_p9 = scmp.ne.s32.totalorder %s181_s30, %s1175_s9  ;;  %p1184_p2 = scmp.lt.s32.totalorder %s1175_s9, %s1175_s9 }
  0x4c   : > { %p1178_p12 = pnand %p1176_p9, %p1399_p13  ;;  %p1185_p4 = por %p1184_p2, %p1183_p1 }
  0x4e   : > { %p1179_p0 = pneg %p1178_p12 }
  0x50   : > { %p1186_p8 = pnand %p1185_p4, %p1179_p0 }
  0x52   : > { %1189 = shalt.err (!%p1186_p8)
}
  0x53   : > { %1015 = dma.hbm_to_vmem [thread:$0]  (!%p1383_p11), %s1650_s3, 1024, %s181_s30, [#allocation9], %s1299_s14, %s1299_s14, %s1300_s20  }
  0x54   : > { %s1472_s10 = sadd.s32 1, %s1294_s18   ;;  %s29_s25 = sadd.s32 1, %s1290_s17 }
  0x55   : > { %s26_s26 = ssub.s32 %s1294_s18, %s1472_s10  ;;  %p36_p8 = scmp.ne.s32.totalorder %s1290_s17, %s1286_s16 }
  0x56   : > { %p27_p4 = scmp.eq.s32.totalorder %s26_s26, 0  ;;  %p37_p13 = scmp.eq.s32.totalorder %s1294_s18, 0 }
  0x57   : > { %p1027_p6 = scmp.lt.s32.totalorder %s1294_s18, 2  ;;  %p1660_p3 = scmp.eq.s32.totalorder %s1353_s19, 1 }
  0x58   : > { %s1482_s12 = scalar_select %p27_p4, %s1290_s17, %s29_s25  }
  0x59   : > { %p38_p10 = por %p37_p13, %p36_p8  ;;  %p1486_p5 = por %p1660_p3, %p36_p8 }
  0x5a   : > { %s194_s24 = sand.u32 1, %s1290_s17   ;;  %s872_s27 = sshll.u32 %s1294_s18, 7 }
  0x5b   : > { %s825_s30 = sshll.u32 %s194_s24, 3  ;;  %s1495_s6 = scalar_lea.hbm %s1647_s0, %s872_s27 }
  0x5c   : > { %s198_s7 = scalar_lea.vmem [#allocation2], %s825_s30  ;;  %p1497_p11 = pnand %p1027_p6, %p38_p10 }
  0x5d   : > { %s205_s8 = sshll.u32 %s198_s7, 4  ;;  %s1503_s28 = scalar_lea.sflag [#allocation3], %s194_s24  ;;  %s1501_s8 = int_to_ptr.vmem [resolvable:$true] %s205_s8 }
  0x5e   : > { %s1190_s11 = scalar_lea.hbm %s1495_s6, 128  ;;  %p1192_p9 = pneg %p1497_p11 }
  0x5f   : > { %p1191_p7 = scmp.ne.s32.totalorder %s1495_s6, %s1190_s11  ;;  %s1195_s27 = scalar_lea.hbm %s1647_s0, 256 }
  0x60   : > { %p1196_p1 = scmp.lt.u32.totalorder %s1495_s6, %s1647_s0  ;;  %p1197_p2 = scmp.lt.u32.totalorder %s1195_s27, %s1190_s11 }
  0x61   : > { %p1193_p12 = pnand %p1192_p9, %p1191_p7  ;;  %p1199_p8 = scmp.lt.u32.totalorder %s1190_s11, %s1495_s6 }
  0x62   : > { %p1198_p4 = por %p1197_p2, %p1196_p1 }
  0x63   : > { %p1194_p0 = pneg %p1193_p12 }
  0x64   : > { %p1200_p13 = por %p1199_p8, %p1198_p4 }
  0x66   : > { %p1201_p6 = pnand %p1200_p13, %p1194_p0 }
  0x68   : > { %1204 = shalt.err (!%p1201_p6)
}
  0x69   : > { %s1205_s24 = scalar_lea.vmem %s1501_s8, 128  ;;  %s1301_s5 = smov [#allocation2]  }
  0x6a   : > { %p1206_p10 = scmp.ne.s32.totalorder %s1501_s8, %s1205_s24  ;;  %s1210_s7 = sshll.u32 %s1301_s5, 4  ;;  %s1211_s7 = int_to_ptr.vmem [resolvable:$false] %s1210_s7 }
  0x6b   : > { %s1212_s26 = scalar_lea.vmem %s1211_s7, 256  ;;  %p1213_p12 = scmp.lt.s32.totalorder %s1501_s8, %s1211_s7 }
  0x6c   : > { %p1208_p3 = pnand %p1206_p10, %p1192_p9  ;;  %p1214_p1 = scmp.lt.s32.totalorder %s1212_s26, %s1205_s24 }
  0x6e   : > { %p1209_p7 = pneg %p1208_p3  ;;  %p1215_p2 = por %p1214_p1, %p1213_p12 }
  0x70   : > { %p1216_p4 = pnand %p1215_p2, %p1209_p7 }
  0x72   : > { %1219 = shalt.err (!%p1216_p4)
}
  0x73   : > { %1019 = dma.hbm_to_vmem [thread:$0]  (!%p1497_p11), %s1495_s6, 128, %s1501_s8, %s1503_s28, %s1299_s14, %s1299_s14, %s1300_s20  }
  0x74   : > { %p1663_p9 = scmp.ne.s32.totalorder %s1657_s23, 0 }
  0x75   : > { %s1537_s11 = sand.u32 (!%p1663_p9), 1, %s1286_s16   ;;  %p1664_p0 = scmp.ne.s32.totalorder (!%p1663_p9), %s1655_s21, 0 }
  0x76   : > { %217 = sbr.rel (%p1663_p9) target bundleno = 1050 (0x41a), region = 36  ;;  %s829_s25 = sshll.u32 (!%p1663_p9), %s1537_s11, 3 }
  0x77   : > { %s220_s27 = scalar_lea.sflag (!%p1663_p9), [#allocation3], %s1537_s11  ;;  %s1541_s30 = scalar_lea.vmem (!%p1663_p9), [#allocation2], %s829_s25 }
  0x7d   : > { %1265 = dma.done.wait (%p1664_p0), %s220_s27, 128  }
  0x7e   : > { %1267 = vsyncadd (%p1664_p0), %s220_s27, 4294967168  ;;  %p1665_p11 = scmp.eq.s32.totalorder %s1353_s19, 0 }
  0x80   : > { %1269 = dma.done.wait (%p1665_p11), [#allocation6], 3072   ;;  %p1666_p8 = pmov %p1665_p11 }
  0x82   : > { %1271 = vsyncadd (%p1666_p8), [#allocation6], 4294964224  ;;  %p1667_p13 = pmov %p1666_p8 }
  0x83   : > { %p1668_p6 = pmov %p1666_p8 }
  0x84   : > { %1273 = dma.done.wait (%p1667_p13), [#allocation9], 1024  }
  0x85   : > { %1275 = vsyncadd (%p1668_p6), [#allocation9], 4294966272  ;;  %v1302_v0 = vmov 0.0   ;;  %vm1303_vm0 = vmmov 0   ;;  %v1073_v1 = vld [vmem:[#allocation5] sm:$0xff]   ;;  %v1074_v2 = vld [vmem:[#allocation5 + $0x8] sm:$0xff]  }
  0x86   : > { %910 = vmatprep.subr.bf16.mxu0 %v1302_v0  ;;  %926 = vmatprep.mubr.msk.bf16.mxu0 %vm1303_vm0, %v1302_v0  ;;  %v1075_v3 = vld [vmem:[#allocation5 + $0x10] sm:$0xff]   ;;  %v1082_v4 = vld [vmem:[#allocation7] sm:$0xff]   ;;  %v1076_v5 = vld [vmem:[#allocation5 + $0x18] sm:$0xff]   ;;  %s833_s21 = sshll.u32 %s1537_s11, 4  ;;  %s873_s20 = sshll.u32 %s1353_s19, 8 }
  0x87   : > { %930 = vmatprep.subr.bf16.mxu1 %v1302_v0  ;;  %946 = vmatprep.mubr.msk.bf16.mxu1 %vm1303_vm0, %v1302_v0  ;;  %v1083_v6 = vld [vmem:[#allocation7 + $0x8] sm:$0xff]   ;;  %v1077_v7 = vld [vmem:[#allocation5 + $0x20] sm:$0xff]   ;;  %v1084_v8 = vld [vmem:[#allocation7 + $0x10] sm:$0xff]   ;;  %s259_s23 = scalar_lea.vmem [#allocation10], %s833_s21  ;;  %s1603_s9 = scalar_lea.hbm %s1651_s4, %s873_s20 }
  0x88   : > { %911 = vmatpush3.bf16.msra.mxu0 %v1073_v1  ;;  %931 = vmatpush3.bf16.msra.mxu1 %v1082_v4  ;;  %v1078_v9 = vld [vmem:[#allocation5 + $0x28] sm:$0xff]   ;;  %v1085_v10 = vld [vmem:[#allocation7 + $0x18] sm:$0xff]   ;;  %v1079_v11 = vld [vmem:[#allocation5 + $0x30] sm:$0xff]   ;;  %s717_s14 = sshll.u32 %s259_s23, 4  ;;  %s704_s28 = scalar_lea.sflag [#allocation4], %s1537_s11  ;;  %s1598_s14 = int_to_ptr.vmem [resolvable:$true] %s717_s14 }
  0x89   : > { %912 = vmatprep.subr.bf16.mxu0 %v1302_v0  ;;  %932 = vmatprep.subr.bf16.mxu1 %v1302_v0  ;;  %v1086_v12 = vld [vmem:[#allocation7 + $0x20] sm:$0xff]   ;;  %v1080_v13 = vld [vmem:[#allocation5 + $0x38] sm:$0xff]   ;;  %v1087_v14 = vld [vmem:[#allocation7 + $0x28] sm:$0xff]   ;;  %s1220_s29 = scalar_lea.vmem %s1598_s14, 256  ;;  %s1304_s19 = smov [#allocation10]  }
  0x8a   : > { %v1081_v15 = vld [vmem:[%s1541_s30] sm:$0xff]   ;;  %v1090_v18 = vld [vmem:[#allocation7 + $0x40] sm:$0xff]   ;;  %v1091_v19 = vld [vmem:[#allocation7 + $0x48] sm:$0xff]   ;;  %p1221_p10 = scmp.ne.s32.totalorder %s1598_s14, %s1220_s29  ;;  %s1224_s24 = sshll.u32 %s1304_s19, 4  ;;  %s1225_s24 = int_to_ptr.vmem [resolvable:$false] %s1224_s24 }
  0x8b   : > { %v1088_v16 = vld [vmem:[#allocation7 + $0x30] sm:$0xff]   ;;  %v1089_v17 = vld [vmem:[#allocation7 + $0x38] sm:$0xff]   ;;  %v1094_v22 = vld [vmem:[#allocation7 + $0x60] sm:$0xff]   ;;  %s1226_s5 = scalar_lea.vmem %s1225_s24, 512  ;;  %p1227_p12 = scmp.lt.s32.totalorder %s1598_s14, %s1225_s24 }
  0x8c   : > { %913 = vmatpush3.bf16.msra.mxu0 %v1074_v2  ;;  %933 = vmatpush3.bf16.msra.mxu1 %v1083_v6  ;;  %v1092_v20 = vld [vmem:[#allocation7 + $0x50] sm:$0xff]   ;;  %v1093_v21 = vld [vmem:[#allocation7 + $0x58] sm:$0xff]   ;;  %v1095_v23 = vld [vmem:[#allocation7 + $0x68] sm:$0xff]   ;;  %p1222_p3 = pnand %p1221_p10, %p1486_p5  ;;  %p1228_p1 = scmp.lt.s32.totalorder %s1226_s5, %s1220_s29 }
  0x8d   : > { %914 = vmatprep.subr.bf16.mxu0 %v1302_v0  ;;  %934 = vmatprep.subr.bf16.mxu1 %v1302_v0  ;;  %v1096_v31 = vld [vmem:[#allocation7 + $0x70] sm:$0xff]   ;;  %v1097_v32 = vld [vmem:[#allocation7 + $0x78] sm:$0xff]   ;;  %v1098_v33 = vld [vmem:[#allocation8] sm:$0xff]  }
  0x8e   : > { %v1099_v34 = vld [vmem:[#allocation8 + $0x8] sm:$0xff]   ;;  %v1100_v35 = vld [vmem:[#allocation8 + $0x10] sm:$0xff]   ;;  %v1101_v36 = vld [vmem:[#allocation8 + $0x18] sm:$0xff]   ;;  %p1223_p7 = pneg %p1222_p3  ;;  %p1229_p2 = por %p1228_p1, %p1227_p12 }
  0x8f   : > { %v1102_v37 = vld [vmem:[#allocation8 + $0x20] sm:$0xff]   ;;  %v1103_v38 = vld [vmem:[#allocation8 + $0x28] sm:$0xff]   ;;  %v1104_v46 = vld [vmem:[#allocation8 + $0x30] sm:$0xff]  }
  0x90   : > { %915 = vmatpush3.bf16.msra.mxu0 %v1075_v3  ;;  %935 = vmatpush3.bf16.msra.mxu1 %v1084_v8  ;;  %v1105_v47 = vld [vmem:[#allocation8 + $0x38] sm:$0xff]   ;;  %p1230_p4 = pnand %p1229_p2, %p1223_p7 }
  0x91   : > { %916 = vmatprep.subr.bf16.mxu0 %v1302_v0  ;;  %936 = vmatprep.subr.bf16.mxu1 %v1302_v0 }
  0x94   : > { %917 = vmatpush3.bf16.msra.mxu0 %v1076_v5  ;;  %937 = vmatpush3.bf16.msra.mxu1 %v1085_v10 }
  0x95   : > { %918 = vmatprep.subr.bf16.mxu0 %v1302_v0  ;;  %938 = vmatprep.subr.bf16.mxu1 %v1302_v0 }
  0x98   : > { %919 = vmatpush3.bf16.msra.mxu0 %v1077_v7  ;;  %939 = vmatpush3.bf16.msra.mxu1 %v1086_v12 }
  0x99   : > { %920 = vmatprep.subr.bf16.mxu0 %v1302_v0  ;;  %940 = vmatprep.subr.bf16.mxu1 %v1302_v0 }
  0x9c   : > { %921 = vmatpush3.bf16.msra.mxu0 %v1078_v9  ;;  %941 = vmatpush3.bf16.msra.mxu1 %v1087_v14 }
  0x9d   : > { %922 = vmatprep.subr.bf16.mxu0 %v1302_v0  ;;  %942 = vmatprep.subr.bf16.mxu1 %v1302_v0 }
  0xa0   : > { %923 = vmatpush3.bf16.msra.mxu0 %v1079_v11  ;;  %943 = vmatpush3.bf16.msra.mxu1 %v1088_v16 }
  0xa1   : > { %924 = vmatprep.subr.bf16.mxu0 %v1302_v0  ;;  %944 = vmatprep.subr.bf16.mxu1 %v1302_v0 }
  0xa4   : > { %925 = vmatpush3.bf16.msra.mxu0 %v1080_v13  ;;  %945 = vmatpush3.bf16.msra.mxu1 %v1089_v17 }
  0xa5   : > { %950 = vmatprep.subr.bf16.mxu0 %v1302_v0  ;;  %970 = vmatprep.subr.bf16.mxu1 %v1302_v0 }
  0xa7   : > { %927 = vmatmul.mubr.bf16.vlgmr.msra.gmra.mrb[0].mxu0 %v1081_v15 }
  0xa8   : > { %966 = vmatprep.mubr.msk.bf16.mxu0 %vm1303_vm0, %v1302_v0  ;;  %951 = vmatpush3.bf16.msra.mxu0 %v1090_v18 }
  0xa9   : > { %952 = vmatprep.subr.bf16.mxu0 %v1302_v0 }
  0xac   : > { %953 = vmatpush3.bf16.msra.mxu0 %v1091_v19 }
  0xad   : > { %954 = vmatprep.subr.bf16.mxu0 %v1302_v0 }
  0xb0   : > { %955 = vmatpush3.bf16.msra.mxu0 %v1092_v20 }
  0xb1   : > { %956 = vmatprep.subr.bf16.mxu0 %v1302_v0 }
  0xb4   : > { %957 = vmatpush3.bf16.msra.mxu0 %v1093_v21 }
  0xb5   : > { %958 = vmatprep.subr.bf16.mxu0 %v1302_v0 }
  0xb8   : > { %959 = vmatpush3.bf16.msra.mxu0 %v1094_v22 }
  0xb9   : > { %960 = vmatprep.subr.bf16.mxu0 %v1302_v0 }
  0xbc   : > { %961 = vmatpush3.bf16.msra.mxu0 %v1095_v23 }
  0xbd   : > { %962 = vmatprep.subr.bf16.mxu0 %v1302_v0 }
  0xc0   : > { %963 = vmatpush3.bf16.msra.mxu0 %v1096_v31 }
  0xc1   : > { %964 = vmatprep.subr.bf16.mxu0 %v1302_v0 }
  0xc4   : > { %965 = vmatpush3.bf16.msra.mxu0 %v1097_v32 }
 0x17a   : > { %v369_v24 = vpop.f32.mrb[0].mxu0 }
 0x17b   : > { %v928_v25 = vpop.f32.mrb[1].mxu0  ;;  %v376_v27 = vmax.f32 %v369_v24, 0.0 }
 0x17c   : > { %v372_v26 = vpop.f32.mrb[2].mxu0 }
 0x17d   : > { %v377_v28 = vmax.f32 %v372_v26, 0.0  ;;  %v929_v29 = vpop.f32.mrb[3].mxu0 }
 0x17f   : > { %v378_v30 = vpack.c.bf16 %v377_v28, %v376_v27 }
 0x181   : > { %947 = vmatmul.mubr.bf16.vlgmr.msra.gmra.mrb[0].mxu1 %v378_v30 }
 0x182   : > { %986 = vmatprep.mubr.msk.bf16.mxu1 %vm1303_vm0, %v1302_v0  ;;  %971 = vmatpush3.bf16.msra.mxu1 %v1098_v33 }
 0x183   : > { %972 = vmatprep.subr.bf16.mxu1 %v1302_v0 }
 0x186   : > { %973 = vmatpush3.bf16.msra.mxu1 %v1099_v34 }
 0x187   : > { %974 = vmatprep.subr.bf16.mxu1 %v1302_v0 }
 0x18a   : > { %975 = vmatpush3.bf16.msra.mxu1 %v1100_v35 }
 0x18b   : > { %976 = vmatprep.subr.bf16.mxu1 %v1302_v0 }
 0x18e   : > { %977 = vmatpush3.bf16.msra.mxu1 %v1101_v36 }
 0x18f   : > { %978 = vmatprep.subr.bf16.mxu1 %v1302_v0 }
 0x192   : > { %979 = vmatpush3.bf16.msra.mxu1 %v1102_v37 }
 0x193   : > { %980 = vmatprep.subr.bf16.mxu1 %v1302_v0 }
 0x196   : > { %981 = vmatpush3.bf16.msra.mxu1 %v1103_v38 }
 0x197   : > { %982 = vmatprep.subr.bf16.mxu1 %v1302_v0 }
 0x19a   : > { %983 = vmatpush3.bf16.msra.mxu1 %v1104_v46 }
 0x19b   : > { %984 = vmatprep.subr.bf16.mxu1 %v1302_v0 }
 0x19e   : > { %985 = vmatpush3.bf16.msra.mxu1 %v1105_v47 }
 0x254   : > { %v477_v39 = vpop.f32.mrb[0].mxu1 }
 0x255   : > { %v948_v40 = vpop.f32.mrb[1].mxu1  ;;  %v484_v42 = vmax.f32 %v477_v39, 0.0 }
 0x256   : > { %v480_v41 = vpop.f32.mrb[2].mxu1 }
 0x257   : > { %v485_v43 = vmax.f32 %v480_v41, 0.0  ;;  %v949_v44 = vpop.f32.mrb[3].mxu1 }
 0x259   : > { %v486_v45 = vpack.c.bf16 %v485_v43, %v484_v42 }
 0x25b   : > { %967 = vmatmul.mubr.bf16.vlgmr.msra.gmra.mrb[4].mxu0 %v486_v45 }
 0x32e   : > { %v586_v48 = vpop.f32.mrb[4].mxu0 }
 0x32f   : > { %v968_v49 = vpop.f32.mrb[5].mxu0  ;;  %v593_v51 = vmax.f32 %v586_v48, 0.0 }
 0x330   : > { %v589_v50 = vpop.f32.mrb[6].mxu0 }
 0x331   : > { %v594_v52 = vmax.f32 %v589_v50, 0.0  ;;  %v969_v53 = vpop.f32.mrb[7].mxu0 }
 0x333   : > { %v595_v54 = vpack.c.bf16 %v594_v52, %v593_v51 }
 0x335   : > { %987 = vmatmul.mubr.bf16.vlgmr.msra.gmra.mrb[4].mxu1 %v595_v54 }
 0x408   : > { %v694_v55 = vpop.f32.mrb[4].mxu1 }
 0x409   : > { %701 = vst [vmem:[%s259_s23] sm:$0xff] %v694_v55  ;;  %v988_v56 = vpop.f32.mrb[5].mxu1 }
 0x40a   : > { %v697_v57 = vpop.f32.mrb[6].mxu1 }
 0x40b   : > { %702 = vst [vmem:[%s259_s23 + $0x8] sm:$0xff] %v697_v57  ;;  %v989_v58 = vpop.f32.mrb[7].mxu1 }
 0x40c   : > { %1233 = shalt.err (!%p1230_p4)
}
 0x40d   : > { %s1234_s7 = scalar_lea.hbm %s1603_s9, 256  ;;  %s1238_s27 = scalar_lea.hbm %s1651_s4, 512 }
 0x40e   : > { %p1235_p9 = scmp.ne.s32.totalorder %s1603_s9, %s1234_s7  ;;  %p1239_p8 = scmp.lt.u32.totalorder %s1603_s9, %s1651_s4 }
 0x40f   : > { %p1240_p13 = scmp.lt.u32.totalorder %s1238_s27, %s1234_s7  ;;  %p1242_p10 = scmp.lt.u32.totalorder %s1234_s7, %s1603_s9 }
 0x410   : > { %p1236_p0 = pnand %p1235_p9, %p1486_p5 }
 0x411   : > { %p1241_p6 = por %p1240_p13, %p1239_p8 }
 0x412   : > { %p1237_p11 = pneg %p1236_p0 }
 0x413   : > { %p1243_p3 = por %p1242_p10, %p1241_p6 }
 0x415   : > { %p1244_p7 = pnand %p1243_p3, %p1237_p11 }
 0x417   : > { %1247 = shalt.err (!%p1244_p7)
}
 0x418   : > { %s1305_s23 = smov 128   ;;  %s1306_s20 = smov 8  }
 0x419   : > { %1004 = dma.vmem_to_hbm [thread:$0]  (%p1486_p5), %s1598_s14, 256, %s1603_s9, %s704_s28, %s1305_s23, %s1305_s23, %s1306_s20  }
 0x41a PF: > { %s732_s6 = sand.u32 1, %s1282_s15   ;;  %p1669_p12 = scmp.ne.s32.totalorder %s1656_s22, 0 }
 0x41b   : > { %p1670_p1 = scmp.ge.s32.totalorder %s1294_s18, 2  ;;  %s733_s8 = scalar_lea.sflag [#allocation4], %s732_s6 }
 0x41d   : > { %p1021_p2 = pnand %p1670_p1, %p1669_p12 }
 0x41f   : > { %1277 = dma.done.wait (!%p1021_p2), %s733_s8, 256  }
 0x420   : > { %1279 = vsyncadd (!%p1021_p2), %s733_s8, 4294967040  ;;  %p19_p4 = scmp.ge.s32.totalorder %s1472_s10, 4   ;;  %s1671_s15 = smov %s1286_s16 }
 0x421   : > { %s1672_s16 = smov %s1290_s17  ;;  %s1673_s17 = smov %s1482_s12 }
 0x422   : > { %s1674_s18 = smov %s1472_s10  ;;  %21 = sbr.rel (!%p19_p4) target bundleno = 7 (0x7), region = 94 }
 0x429   :  { %738 = vsyncpa [#allocation3], 1 }
 0x42a   :  { %740 = vsyncpa [#allocation3 + $0x1], 1 }
 0x42b   :  { %741 = vsyncpa [#allocation6], 1 }
 0x42c   :  { %742 = vsyncpa [#allocation9], 1 }
 0x42d   :  { %743 = vsyncpa [#allocation4], 1 }
 0x42e   :  { %745 = vsyncpa [#allocation4 + $0x1], 1 }

</bundles_post_ra>
